<compile_context>
chip_gen: v5e
topology: v5e:2x2
jax: 0.10.0
libtpu: 0.0.40
codegen_flags: <defaults>
</compile_context>

<pallas_src>
import functools

import jax
import jax.numpy as jnp
from jax.experimental import pallas as pl
from jax.experimental.pallas import tpu as pltpu


def _round_up(v, m):
    return ((v + m - 1) // m) * m


def _se_weight_kernel(x_ref, w1_ref, b1_ref, w2_ref, b2_ref, o_ref, acc_ref,
                      *, hw_total, thw, mask_last_hw_block):
    # Grid = (batch blocks, HW blocks); HW axis is the innermost reduction axis.
    # x_ref:  (Nb, C, THW)  native NCHW layout, spatial flattened on lane axis
    # w1_ref: (C, Cr)   b1_ref: (1, Cr)    w2_ref: (Cr, C)   b2_ref: (1, C)
    # o_ref:  (Nb, C)   acc_ref: (Nb, C) f32 partial-sum accumulator
    k = pl.program_id(1)

    @pl.when(k == 0)
    def _init():
        acc_ref[...] = jnp.zeros_like(acc_ref)

    x = x_ref[...]
    if mask_last_hw_block:  # static: only compiled in when HW % THW != 0
        col = jax.lax.broadcasted_iota(jnp.int32, x.shape, dimension=2)
        x = jnp.where(k * thw + col < hw_total, x, jnp.zeros_like(x))
    # Fused cast-into-reduce: accumulate the pool in f32 without materializing
    # an f32 copy of the whole block.
    acc_ref[...] += jnp.sum(x, axis=-1, dtype=jnp.float32)

    @pl.when(k == pl.num_programs(1) - 1)
    def _finalize():
        pooled = acc_ref[...] * (1.0 / hw_total)              # (Nb, C) avg pool
        w1 = w1_ref[...]
        h = jnp.dot(pooled.astype(w1.dtype), w1,
                    preferred_element_type=jnp.float32) + b1_ref[...]  # fc1
        h = jnp.maximum(h, 0.0)                               # ReLU
        w2 = w2_ref[...]
        o = jnp.dot(h.astype(w2.dtype), w2,
                    preferred_element_type=jnp.float32) + b2_ref[...]  # fc2
        o_ref[...] = jax.nn.sigmoid(o).astype(o_ref.dtype)    # Sigmoid


def se_weight_module(x_nchw, w1, b1, w2, b2):
    """x_nchw: (N, C, H, W). Returns (N, C, 1, 1) like the PyTorch module."""
    N, C, H, W = x_nchw.shape
    Cr = w1.shape[1]
    HW = H * W
    itemsize = x_nchw.dtype.itemsize

    # Free reshape (no transpose, no extra HBM traffic): NCHW -> (N, C, HW).
    x = x_nchw.reshape(N, C, HW)
    b1_2d = b1.reshape(1, Cr).astype(jnp.float32)
    b2_2d = b2.reshape(1, C).astype(jnp.float32)

    # ---- padded VMEM footprint accounting -----------------------------------
    pack = {1: 32, 2: 16}.get(itemsize, 8)          # sublane packing per dtype
    c_pad = _round_up(C, pack)
    hw_lane = _round_up(HW, 128)                    # lane axis pads to 128
    bytes_per_image = c_pad * hw_lane * itemsize    # padded footprint, 1 image

    BLOCK_BUDGET = 8 * 1024 * 1024                  # per-buffer x block budget

    fit = BLOCK_BUDGET // max(1, bytes_per_image)
    if fit >= min(N, 8):
        # Case A: whole-HW blocks, batch several images per step.
        THW = HW
        Nb = min(N, fit)
        if Nb >= N:
            Nb = N
            if N > 8:
                # Keep >= 2 grid steps so v7x can shard the "parallel" batch
                # axis across both TensorCores, with Nb still a multiple of 8.
                Nb = max(8, (pl.cdiv(N, 2) // 8) * 8)
        else:
            Nb = (Nb // 8) * 8                       # >= 8 here by construction
    else:
        # Case B: image(s) too large for one block -> split HW (inner axis).
        Nb = min(N, 8)                               # multiple of 8, or == N
        THW = (BLOCK_BUDGET // (Nb * c_pad * itemsize)) // 128 * 128
        THW = max(128, THW)
        if THW >= HW:
            THW = HW
    n_n = pl.cdiv(N, Nb)
    n_hw = pl.cdiv(HW, THW)
    mask_last = (n_hw > 1) and (HW % THW != 0)

    # Explicit VMEM limit: double-buffered x block (+ optional mask temp) plus
    # headroom. Above v5e's 16 MiB default scoped limit, below v7x's 64 MiB
    # physical VMEM on every generation.
    block_x_bytes = Nb * c_pad * _round_up(THW, 128) * itemsize
    mask_tmp = block_x_bytes if mask_last else 0
    vmem_limit = int(min(56 * 1024 * 1024,
                         max(32 * 1024 * 1024,
                             2 * block_x_bytes + mask_tmp + 8 * 1024 * 1024)))

    cost = pl.CostEstimate(
        flops=int(N * C * HW + 2 * N * C * Cr * 2),          # pool + fc1 + fc2
        transcendentals=int(N * C),                          # sigmoid
        bytes_accessed=int(x.size * itemsize
                           + w1.size * w1.dtype.itemsize
                           + w2.size * w2.dtype.itemsize
                           + (Cr + C) * 4
                           + N * C * itemsize),
    )

    kernel = functools.partial(_se_weight_kernel, hw_total=HW, thw=THW,
                               mask_last_hw_block=mask_last)

    out = pl.pallas_call(
        kernel,
        out_shape=jax.ShapeDtypeStruct((N, C), x_nchw.dtype),
        grid_spec=pltpu.PrefetchScalarGridSpec(
            num_scalar_prefetch=0,
            grid=(n_n, n_hw),
            in_specs=[
                pl.BlockSpec((Nb, C, THW), lambda n, k: (n, 0, k)),   # x
                pl.BlockSpec((C, Cr), lambda n, k: (0, 0)),           # w1
                pl.BlockSpec((1, Cr), lambda n, k: (0, 0)),           # b1
                pl.BlockSpec((Cr, C), lambda n, k: (0, 0)),           # w2
                pl.BlockSpec((1, C), lambda n, k: (0, 0)),            # b2
            ],
            out_specs=pl.BlockSpec((Nb, C), lambda n, k: (n, 0)),
            scratch_shapes=[pltpu.VMEM((Nb, C), jnp.float32)],
        ),
        compiler_params=pltpu.CompilerParams(
            dimension_semantics=("parallel", "arbitrary"),
            vmem_limit_bytes=vmem_limit),
        cost_estimate=cost,
    )(x, w1, b1_2d, w2, b2_2d)

    return out.reshape(N, C, 1, 1)


def se_weight_reference(x_nchw, w1, b1, w2, b2):
    """Pure-JAX reference matching the PyTorch forward."""
    pooled = jnp.mean(x_nchw.astype(jnp.float32), axis=(2, 3))   # (N, C)
    h = jnp.maximum(pooled @ w1 + b1, 0.0)                       # (N, Cr)
    o = jax.nn.sigmoid(h @ w2 + b2)                              # (N, C)
    return o.reshape(*o.shape, 1, 1).astype(x_nchw.dtype)


if __name__ == "__main__":
    # Small shapes consistent with the module: channels divisible by the
    # default reduction (16), so channels=64 -> hidden=4.
    N, C, H, W = 2, 64, 8, 8
    reduction = 16
    Cr = C // reduction

    key = jax.random.PRNGKey(0)
    kx, k1, k2, k3, k4 = jax.random.split(key, 5)

    x = jax.random.normal(kx, (N, C, H, W), dtype=jnp.float32)

    # PyTorch Conv2d weight shape is (out, in, 1, 1); we store the equivalent
    # dense weights transposed as (in, out) for (Nb, in) @ (in, out) matmuls.
    w1 = jax.random.normal(k1, (C, Cr), dtype=jnp.float32) * 0.1   # fc1
    b1 = jax.random.normal(k2, (Cr,), dtype=jnp.float32) * 0.1
    w2 = jax.random.normal(k3, (Cr, C), dtype=jnp.float32) * 0.1   # fc2
    b2 = jax.random.normal(k4, (C,), dtype=jnp.float32) * 0.1

    out = se_weight_module(x, w1, b1, w2, b2)
    jax.block_until_ready(out)

    ref = se_weight_reference(x, w1, b1, w2, b2)
    assert out.shape == (N, C, 1, 1), out.shape
    assert jnp.allclose(out, ref, atol=1e-5, rtol=1e-5), "mismatch vs reference"

    print("KERNEL_OK")
</pallas_src>

<mosaic_0001>
module attributes {stable_mosaic.version = 11 : i64} {
  func.func @_se_weight_kernel(%arg0: i32, %arg1: i32, %arg2: memref<2x64x64xf32, #tpu.memory_space<vmem>>, %arg3: memref<64x4xf32, #tpu.memory_space<vmem>>, %arg4: memref<1x4xf32, #tpu.memory_space<vmem>>, %arg5: memref<4x64xf32, #tpu.memory_space<vmem>>, %arg6: memref<1x64xf32, #tpu.memory_space<vmem>>, %arg7: memref<2x64xf32, #tpu.memory_space<vmem>>, %arg8: memref<2x64xf32, #tpu.memory_space<vmem>>) attributes {dimension_semantics = [#tpu.dimension_semantics<parallel>, #tpu.dimension_semantics<arbitrary>], iteration_bounds = array<i64: 1, 1>, scalar_prefetch = 0 : i64, scratch_operands = 1 : i64, tpu.core_type = #tpu.core_type<tc>, window_params = [{transform_indices = @transform_0, window_bounds = array<i64: 2, 64, 64>}, {pipeline_mode = #tpu.pipeline_mode<synchronous>, transform_indices = @transform_1, window_bounds = array<i64: 64, 4>}, {pipeline_mode = #tpu.pipeline_mode<synchronous>, transform_indices = @transform_2, window_bounds = array<i64: 1, 4>}, {pipeline_mode = #tpu.pipeline_mode<synchronous>, transform_indices = @transform_3, window_bounds = array<i64: 4, 64>}, {pipeline_mode = #tpu.pipeline_mode<synchronous>, transform_indices = @transform_4, window_bounds = array<i64: 1, 64>}, {transform_indices = @transform_5, window_bounds = array<i64: 2, 64>}]} {
    %c0_i32 = arith.constant 0 : i32
    %0 = arith.cmpi eq, %arg1, %c0_i32 : i32
    %1 = arith.extui %0 : i1 to i32
    %c0_i32_0 = arith.constant 0 : i32
    %2 = arith.cmpi ne, %1, %c0_i32_0 : i32
    scf.if %2 {
      %cst_9 = arith.constant 0.000000e+00 : f32
      %11 = vector.broadcast %cst_9 : f32 to vector<2x64xf32>
      %c0_10 = arith.constant 0 : index
      %c0_11 = arith.constant 0 : index
      %12 = vector.load %arg8[%c0_10, %c0_11] : memref<2x64xf32, #tpu.memory_space<vmem>>, vector<2x64xf32>
      tpu.vector_store %arg8[%c0_10, %c0_11], %11 {strides = array<i32>} : memref<2x64xf32, #tpu.memory_space<vmem>>, vector<2x64xf32>,
    } else {
    }
    %c0 = arith.constant 0 : index
    %c0_1 = arith.constant 0 : index
    %c0_2 = arith.constant 0 : index
    %3 = vector.load %arg2[%c0, %c0_1, %c0_2] : memref<2x64x64xf32, #tpu.memory_space<vmem>>, vector<2x64x64xf32>
    %c0_3 = arith.constant 0 : index
    %c0_4 = arith.constant 0 : index
    %4 = vector.load %arg8[%c0_3, %c0_4] : memref<2x64xf32, #tpu.memory_space<vmem>>, vector<2x64xf32>
    %cst = arith.constant dense<0.000000e+00> : vector<2x64xf32>
    %5 = vector.multi_reduction <add>, %3, %cst [2] : vector<2x64x64xf32> to vector<2x64xf32>
    %6 = arith.addf %4, %5 : vector<2x64xf32>
    %c0_5 = arith.constant 0 : index
    %c0_6 = arith.constant 0 : index
    %7 = vector.load %arg8[%c0_5, %c0_6] : memref<2x64xf32, #tpu.memory_space<vmem>>, vector<2x64xf32>
    tpu.vector_store %arg8[%c0_5, %c0_6], %6 {strides = array<i32>} : memref<2x64xf32, #tpu.memory_space<vmem>>, vector<2x64xf32>,
    %c0_i32_7 = arith.constant 0 : i32
    %8 = arith.cmpi eq, %arg1, %c0_i32_7 : i32
    %9 = arith.extui %8 : i1 to i32
    %c0_i32_8 = arith.constant 0 : i32
    %10 = arith.cmpi ne, %9, %c0_i32_8 : i32
    scf.if %10 {
      %c0_9 = arith.constant 0 : index
      %c0_10 = arith.constant 0 : index
      %11 = vector.load %arg8[%c0_9, %c0_10] : memref<2x64xf32, #tpu.memory_space<vmem>>, vector<2x64xf32>
      %cst_11 = arith.constant 1.562500e-02 : f32
      %12 = vector.broadcast %cst_11 : f32 to vector<2x64xf32>
      %13 = arith.mulf %11, %12 : vector<2x64xf32>
      %c0_12 = arith.constant 0 : index
      %c0_13 = arith.constant 0 : index
      %14 = vector.load %arg3[%c0_12, %c0_13] : memref<64x4xf32, #tpu.memory_space<vmem>>, vector<64x4xf32>
      %cst_14 = arith.constant dense<0.000000e+00> : vector<2x4xf32>
      %15 = tpu.matmul %13, %14, %cst_14 {dimension_numbers = #tpu.dot_dimension_numbers<[1], [0], [0], [1], [0, 0, 1, 1], [], []>} : vector<2x64xf32>, vector<64x4xf32>, vector<2x4xf32> -> vector<2x4xf32>
      %c0_15 = arith.constant 0 : index
      %c0_16 = arith.constant 0 : index
      %16 = vector.load %arg4[%c0_15, %c0_16] : memref<1x4xf32, #tpu.memory_space<vmem>>, vector<1x4xf32>
      %17 = vector.broadcast %16 : vector<1x4xf32> to vector<2x4xf32>
      %18 = arith.addf %15, %17 : vector<2x4xf32>
      %cst_17 = arith.constant 0.000000e+00 : f32
      %19 = vector.broadcast %cst_17 : f32 to vector<2x4xf32>
      %20 = arith.maximumf %18, %19 : vector<2x4xf32>
      %c0_18 = arith.constant 0 : index
      %c0_19 = arith.constant 0 : index
      %21 = vector.load %arg5[%c0_18, %c0_19] : memref<4x64xf32, #tpu.memory_space<vmem>>, vector<4x64xf32>
      %cst_20 = arith.constant dense<0.000000e+00> : vector<2x64xf32>
      %22 = tpu.matmul %20, %21, %cst_20 {dimension_numbers = #tpu.dot_dimension_numbers<[1], [0], [0], [1], [0, 0, 1, 1], [], []>} : vector<2x4xf32>, vector<4x64xf32>, vector<2x64xf32> -> vector<2x64xf32>
      %c0_21 = arith.constant 0 : index
      %c0_22 = arith.constant 0 : index
      %23 = vector.load %arg6[%c0_21, %c0_22] : memref<1x64xf32, #tpu.memory_space<vmem>>, vector<1x64xf32>
      %24 = vector.broadcast %23 : vector<1x64xf32> to vector<2x64xf32>
      %25 = arith.addf %22, %24 : vector<2x64xf32>
      %26 = arith.negf %25 : vector<2x64xf32>
      %27 = math.exp %26 : vector<2x64xf32>
      %cst_23 = arith.constant 1.000000e+00 : f32
      %28 = vector.broadcast %cst_23 : f32 to vector<2x64xf32>
      %29 = arith.addf %28, %27 : vector<2x64xf32>
      %30 = arith.divf %28, %29 : vector<2x64xf32>
      %c0_24 = arith.constant 0 : index
      %c0_25 = arith.constant 0 : index
      %31 = vector.load %arg7[%c0_24, %c0_25] : memref<2x64xf32, #tpu.memory_space<vmem>>, vector<2x64xf32>
      tpu.vector_store %arg7[%c0_24, %c0_25], %30 {strides = array<i32>} : memref<2x64xf32, #tpu.memory_space<vmem>>, vector<2x64xf32>,
    } else {
    }
    return
  }
  func.func @transform_0(%arg0: i32, %arg1: i32) -> (i32, i32, i32) {
    %c0_i32 = arith.constant 0 : i32
    %c0_i32_0 = arith.constant 0 : i32
    return %arg0, %c0_i32, %arg1 : i32, i32, i32
  }
  func.func @transform_1(%arg0: i32, %arg1: i32) -> (i32, i32) {
    %c0_i32 = arith.constant 0 : i32
    %c0_i32_0 = arith.constant 0 : i32
    %c0_i32_1 = arith.constant 0 : i32
    return %c0_i32, %c0_i32_0 : i32, i32
  }
  func.func @transform_2(%arg0: i32, %arg1: i32) -> (i32, i32) {
    %c0_i32 = arith.constant 0 : i32
    %c0_i32_0 = arith.constant 0 : i32
    %c0_i32_1 = arith.constant 0 : i32
    return %c0_i32, %c0_i32_0 : i32, i32
  }
  func.func @transform_3(%arg0: i32, %arg1: i32) -> (i32, i32) {
    %c0_i32 = arith.constant 0 : i32
    %c0_i32_0 = arith.constant 0 : i32
    %c0_i32_1 = arith.constant 0 : i32
    return %c0_i32, %c0_i32_0 : i32, i32
  }
  func.func @transform_4(%arg0: i32, %arg1: i32) -> (i32, i32) {
    %c0_i32 = arith.constant 0 : i32
    %c0_i32_0 = arith.constant 0 : i32
    %c0_i32_1 = arith.constant 0 : i32
    return %c0_i32, %c0_i32_0 : i32, i32
  }
  func.func @transform_5(%arg0: i32, %arg1: i32) -> (i32, i32) {
    %c0_i32 = arith.constant 0 : i32
    %c0_i32_0 = arith.constant 0 : i32
    return %arg0, %c0_i32 : i32, i32
  }
}

</mosaic_0001>

<bundles_post_ra>
// kernel: tpu_custom_call.1
= control target key start
LH: loop header
LB: loop body
LE: loop exit
PB: predicated region body
PF: predicated region fallthrough
CT: control target
= control target key end

     0   :  { %10 = vsyncpa [#allocation4], 0  ;;  %s453_s0 = inlined_call_operand.hbm [shape: f32[2,64,64], index: 0, kind: input, shape index: {}]   ;;  %s454_s1 = inlined_call_operand.vmem [shape: f32[64,4], index: 1, kind: input, shape index: {}]   ;;  %s455_s2 = inlined_call_operand.vmem [shape: f32[1,4], index: 2, kind: input, shape index: {}]   ;;  %s456_s3 = inlined_call_operand.vmem [shape: f32[4,64], index: 3, kind: input, shape index: {}]   ;;  %s457_s4 = inlined_call_operand.vmem [shape: f32[1,64], index: 4, kind: input, shape index: {}]   ;;  %s458_s5 = inlined_call_operand.hbm [shape: f32[2,64], index: 5, kind: output, shape index: {}]  }
   0x1   :  { %11 = vsyncpa [#allocation5], 0  ;;  %s16_s20 = sshll.u32 %s453_s0, 4  ;;  %s355_s21 = smov [#allocation3]   ;;  %s17_s20 = int_to_ptr.hbm [resolvable:$true] %s16_s20 }
   0x2   :  { %s18_s22 = sshll.u32 %s355_s21, 4  ;;  %s356_s23 = smov 128   ;;  %s19_s22 = int_to_ptr.vmem [resolvable:$true] %s18_s22 }
   0x3   :  { %s357_s24 = smov 8  }
   0x4   :  { %24 = dma.hbm_to_vmem [thread:$0]  %s17_s20, 2048, %s19_s22, [#allocation4], %s356_s23, %s356_s23, %s357_s24  }
   0x5   :  { %351 = dma.done.wait [#allocation4], 2048  }
   0x6   :  { %352 = vsyncadd [#allocation4], 4294965248  ;;  %vm60_vm0 = vcmask 523264   ;;  %v51_v0 = vld [vmem:[#allocation3 + $0x40] sm:$0xff]  ;;  %v45_v2 = vld [vmem:[#allocation3 + $0x10] sm:$0xff]  ;;  %vm41_vm1 = vcmask 517120   ;;  %v125_v46 = vlaneseq }
   0x7   :  { %v43_v1 = vld [vmem:[#allocation3] sm:$0xff]  ;;  %v85_v3 = vsel %vm60_vm0, %v51_v0, 0.0  ;;  %v67_v5 = vsel %vm60_vm0, %v45_v2, 0.0  ;;  %v52_v6 = vld [vmem:[#allocation3 + $0x48] sm:$0xff]  ;;  %v53_v8 = vld [vmem:[#allocation3 + $0x50] sm:$0xff]  ;;  %v358_v35 = vmov 0.0  }
   0x8   :  { %v61_v4 = vsel %vm60_vm0, %v43_v1, 0.0  ;;  %86 = vadd.xlane.f32.xlu1 %v85_v3  ;;  %68 = vadd.xlane.f32.xlu2 %v67_v5  ;;  %v44_v7 = vld [vmem:[#allocation3 + $0x8] sm:$0xff]  ;;  %v88_v9 = vsel %vm60_vm0, %v52_v6, 0.0  ;;  %v91_v11 = vsel %vm60_vm0, %v53_v8, 0.0  ;;  %v54_v12 = vld [vmem:[#allocation3 + $0x58] sm:$0xff]  ;;  %v47_v14 = vld [vmem:[#allocation3 + $0x20] sm:$0xff] }
   0x9   :  { %62 = vadd.xlane.f32.xlu0 %v61_v4  ;;  %v64_v10 = vsel %vm60_vm0, %v44_v7, 0.0  ;;  %v46_v13 = vld [vmem:[#allocation3 + $0x18] sm:$0xff]  ;;  %v94_v15 = vsel %vm60_vm0, %v54_v12, 0.0  ;;  %v73_v17 = vsel %vm60_vm0, %v47_v14, 0.0  ;;  %v48_v18 = vld [vmem:[#allocation3 + $0x28] sm:$0xff]  ;;  %v55_v19 = vld [vmem:[#allocation3 + $0x60] sm:$0xff] }
   0xa   :  { %v70_v16 = vsel %vm60_vm0, %v46_v13, 0.0  ;;  %v56_v20 = vld [vmem:[#allocation3 + $0x68] sm:$0xff]  ;;  %v76_v21 = vsel %vm60_vm0, %v48_v18, 0.0  ;;  %v97_v22 = vsel %vm60_vm0, %v55_v19, 0.0  ;;  %v57_v24 = vld [vmem:[#allocation3 + $0x70] sm:$0xff]  ;;  %v50_v26 = vld [vmem:[#allocation3 + $0x38] sm:$0xff] }
   0xb   :  { %v100_v23 = vsel %vm60_vm0, %v56_v20, 0.0  ;;  %v49_v25 = vld [vmem:[#allocation3 + $0x30] sm:$0xff]  ;;  %v103_v27 = vsel %vm60_vm0, %v57_v24, 0.0  ;;  %v82_v29 = vsel %vm60_vm0, %v50_v26, 0.0  ;;  %v58_v30 = vld [vmem:[#allocation3 + $0x78] sm:$0xff]  ;;  %v187_v41 = vld [vmem:[%s454_s1 + $0x28] sm:$0xff] }
   0xc   :  { %v79_v28 = vsel %vm60_vm0, %v49_v25, 0.0  ;;  %v106_v31 = vsel %vm60_vm0, %v58_v30, 0.0  ;;  %42 = vst.msk [vmem:[#allocation2] sm:$0x3] %vm41_vm1, %v358_v35  ;;  %v189_v39 = vld [vmem:[%s454_s1 + $0x38] sm:$0xff]  ;;  %v188_v40 = vld [vmem:[%s454_s1 + $0x30] sm:$0xff] }
   0xd   :  { %205 = vmatpush.msra.mxu0 %v189_v39  ;;  %v186_v42 = vld [vmem:[%s454_s1 + $0x20] sm:$0xff]  ;;  %v185_v43 = vld [vmem:[%s454_s1 + $0x18] sm:$0xff]  ;;  %v184_v48 = vld [vmem:[%s454_s1 + $0x10] sm:$0xff]  ;;  %v126_v50 = vand.u32 127, %v125_v46  ;;  %vm130_vm2 = vcmask 130112   ;;  %vm134_vm3 = vcmask 195712  }
   0xe   :  { %v183_v49 = vld [vmem:[%s454_s1 + $0x8] sm:$0xff]  ;;  %v182_v51 = vld [vmem:[%s454_s1] sm:$0xff]  ;;  %vm138_vm4 = vcmask 261312   ;;  %vm142_vm5 = vcmask 326912   ;;  %vm146_vm6 = vcmask 392512   ;;  %vm150_vm7 = vcmask 458112  }
   0xf   :  { %206 = vmatpush.msra.mxu0 %v188_v40  ;;  %v128_v52 = vadd.s32 4294967288, %v126_v50  ;;  %v132_v55 = vadd.s32 4294967280, %v126_v50  ;;  %v136_v58 = vadd.s32 4294967272, %v126_v50  ;;  %v140_v63 = vadd.s32 4294967264, %v126_v50 }
  0x10   :  { %89 = vadd.xlane.f32.xlu1 %v88_v9  ;;  %92 = vadd.xlane.f32.xlu2 %v91_v11  ;;  %v144_v2 = vadd.s32 4294967256, %v126_v50  ;;  %v148_v4 = vadd.s32 4294967248, %v126_v50  ;;  %v152_v14 = vadd.s32 4294967240, %v126_v50  ;;  %vm154_vm8 = vcmask 523712  }
  0x11   :  { %65 = vadd.xlane.f32.xlu0 %v64_v10  ;;  %207 = vmatpush.msra.mxu0 %v187_v41  ;;  %vm171_vm9 = vcmask 1041409   ;;  %vm227_vm10 = vcmask 1043456   ;;  %vm223_vm11 = vcmask 31744  }
  0x13   :  { %208 = vmatpush.msra.mxu0 %v186_v42  ;;  %v59_v30 = vld [vmem:[#allocation2] sm:$0x3] }
  0x14   :  { %v298_v42 = vld [vmem:[%s457_s4] ss:$0 sm:$0xff]  ;;  %s278_s4 = sshll.u32 %s458_s5, 4  ;;  %s279_s4 = int_to_ptr.hbm [resolvable:$true] %s278_s4 }
  0x15   :  { %209 = vmatpush.msra.mxu0 %v185_v43 }
  0x17   :  { %210 = vmatpush.msra.mxu0 %v184_v48 }
  0x18   :  { %95 = vadd.xlane.f32.xlu1 %v94_v15  ;;  %74 = vadd.xlane.f32.xlu2 %v73_v17 }
  0x19   :  { %71 = vadd.xlane.f32.xlu0 %v70_v16  ;;  %211 = vmatpush.msra.mxu0 %v183_v49 }
  0x1b   :  { %212 = vmatpush.msra.mxu0 %v182_v51 }
  0x20   :  { %77 = vadd.xlane.f32.xlu1 %v76_v21  ;;  %101 = vadd.xlane.f32.xlu2 %v100_v23 }
  0x21   :  { %98 = vadd.xlane.f32.xlu0 %v97_v22 }
  0x28   :  { %104 = vadd.xlane.f32.xlu1 %v103_v27  ;;  %83 = vadd.xlane.f32.xlu2 %v82_v29 }
  0x29   :  { %80 = vadd.xlane.f32.xlu0 %v79_v28 }
  0x31   :  { %107 = vadd.xlane.f32.xlu0 %v106_v31 }
  0x7b   :  { %v87_v32 = vpop.xlane.xlu1 %86  ;;  %v69_v34 = vpop.xlane.xlu2 %68 }
  0x7c   :  { %v63_v33 = vpop.xlane.xlu0 %62  ;;  %v156_v59 = vperm.slane %v87_v32, %v126_v50  ;;  %v133_v62 = vperm.slane %v69_v34, %v132_v55 }
  0x7d   :  { %v127_v60 = vperm.slane %v63_v33, %v126_v50 }
  0x83   :  { %v90_v36 = vpop.xlane.xlu1 %89  ;;  %v93_v38 = vpop.xlane.xlu2 %92 }
  0x84   :  { %v66_v37 = vpop.xlane.xlu0 %65  ;;  %v157_v61 = vperm.slane %v90_v36, %v128_v52  ;;  %v159_v3 = vperm.slane %v93_v38, %v132_v55  ;;  %v297_v38 = vld [vmem:[%s455_s2] ss:$0 sm:$0xff]  ;;  %s359_s2 = smov [#allocation6]  }
  0x85   :  { %v129_v57 = vperm.slane %v66_v37, %v128_v52  ;;  %v218_v37 = vld [vmem:[%s456_s3] sm:$0xf]  ;;  %s276_s3 = sshll.u32 %s359_s2, 4  ;;  %s277_s3 = int_to_ptr.vmem [resolvable:$true] %s276_s3 }
  0x86   :  { %v158_v6 = vsel %vm130_vm2, %v157_v61, %v156_v59  ;;  %289 = vmatpush.msk.msra.mxu1 %vm227_vm10, %v218_v37 }
  0x87   :  { %v131_v0 = vsel %vm130_vm2, %v129_v57, %v127_v60  ;;  %v160_v15 = vsel %vm134_vm3, %v159_v3, %v158_v6 }
  0x88   :  { %v135_v8 = vsel %vm134_vm3, %v133_v62, %v131_v0 }
  0x8b   :  { %v96_v44 = vpop.xlane.xlu1 %95  ;;  %v75_v47 = vpop.xlane.xlu2 %74 }
  0x8c   :  { %v72_v45 = vpop.xlane.xlu0 %71  ;;  %v161_v7 = vperm.slane %v96_v44, %v136_v58  ;;  %v141_v9 = vperm.slane %v75_v47, %v140_v63 }
  0x8d   :  { %v137_v1 = vperm.slane %v72_v45, %v136_v58 }
  0x8e   :  { %v162_v18 = vsel %vm138_vm4, %v161_v7, %v160_v15 }
  0x8f   :  { %v139_v11 = vsel %vm138_vm4, %v137_v1, %v135_v8 }
  0x90   :  { %v143_v20 = vsel %vm142_vm5, %v141_v9, %v139_v11 }
  0x93   :  { %v78_v54 = vpop.xlane.xlu1 %77  ;;  %v102_v56 = vpop.xlane.xlu2 %101 }
  0x94   :  { %v99_v53 = vpop.xlane.xlu0 %98  ;;  %v145_v12 = vperm.slane %v78_v54, %v144_v2  ;;  %v165_v19 = vperm.slane %v102_v56, %v144_v2 }
  0x95   :  { %v163_v10 = vperm.slane %v99_v53, %v140_v63 }
  0x96   :  { %v147_v23 = vsel %vm146_vm6, %v145_v12, %v143_v20 }
  0x97   :  { %v164_v21 = vsel %vm142_vm5, %v163_v10, %v162_v18 }
  0x98   :  { %v166_v27 = vsel %vm146_vm6, %v165_v19, %v164_v21 }
  0x9b   :  { %v105_v13 = vpop.xlane.xlu1 %104  ;;  %v84_v17 = vpop.xlane.xlu2 %83 }
  0x9c   :  { %v81_v5 = vpop.xlane.xlu0 %80  ;;  %v167_v22 = vperm.slane %v105_v13, %v148_v4  ;;  %v153_v24 = vperm.slane %v84_v17, %v152_v14 }
  0x9d   :  { %v149_v16 = vperm.slane %v81_v5, %v148_v4 }
  0x9e   :  { %v168_v29 = vsel %vm150_vm7, %v167_v22, %v166_v27 }
  0x9f   :  { %v151_v25 = vsel %vm150_vm7, %v149_v16, %v147_v23 }
  0xa0   :  { %v155_v31 = vsel %vm154_vm8, %v153_v24, %v151_v25 }
  0xa4   :  { %v108_v26 = vpop.xlane.xlu0 %107 }
  0xa5   :  { %v169_v28 = vperm.slane %v108_v26, %v152_v14 }
  0xa7   :  { %v170_v32 = vsel %vm154_vm8, %v169_v28, %v168_v29 }
  0xa8   :  { %v172_v33 = vsel %vm171_vm9, %v170_v32, %v155_v31 }
  0xa9   :  { %v174_v34 = vadd.f32 %v172_v33, %v59_v30 }
  0xab   :  { %176 = vst.msk [vmem:[#allocation2] sm:$0x3] %vm41_vm1, %v174_v34 }
  0xb2   :  { %v180_v35 = vld [vmem:[#allocation2] sm:$0x3] }
  0xb3   :  { %v181_v36 = vmul.f32 0.015625, %v180_v35 }
  0xb5   :  { %288 = vmatmul.msk.f32.vlgmr.msra.gmra.mxu0 %vm60_vm0, %v181_v36 }
 0x132   :  { %v214_v39 = vpop.f32.mrf.mxu0 }
 0x133   :  { %v215_v40 = vadd.f32 %v297_v38, %v214_v39 }
 0x135   :  { %v217_v41 = vmax.f32 %v215_v40, 0.0 }
 0x137   :  { %290 = vmatmul.msk.f32.vlgmr.msra.gmra.mxu1 %vm223_vm11, %v217_v41 }
 0x1b4   :  { %v248_v43 = vpop.f32.mrf.mxu1 }
 0x1b5   :  { %v249_v44 = vadd.f32 %v298_v42, %v248_v43 }
 0x1b7   :  { %v291_v45 = vmul.f32 -1.442695, %v249_v44 }
 0x1b9   :  { %299 = vpow2.f32 %v291_v45 }
 0x1bf   :  { %v300_v46 = vpop.eup %299 }
 0x1c0   :  { %v254_v47 = vadd.f32 1.0, %v300_v46 }
 0x1c2   :  { %301 = vrcp.f32 %v254_v47  ;;  %v266_v51 = vand.u32 2147483648, %v254_v47  ;;  %v264_v53 = vand.u32 2147483647, %v254_v47  ;;  %vm260_vm13 = vweird.f32 %v254_v47 }
 0x1c4   :  { %v267_v55 = vor.u32 1.1754944e-38, %v266_v51  ;;  %vm265_vm15 = vcmp.eq.f32.partialorder %v264_v53, 8.507059e+37 }
 0x1c8   :  { %v302_v48 = vpop.eup %301 }
 0x1c9   :  { %v256_v49 = vmul.f32 %v302_v48, %v254_v47  ;;  %vm261_vm12 = vweird.f32 %v302_v48 }
 0x1ca   :  { %vm262_vm14 = vmor %vm260_vm13, %vm261_vm12 }
 0x1cb   :  { %v257_v50 = vsub.f32 1.0, %v256_v49 }
 0x1cd   :  { %v258_v52 = vmul.f32 %v302_v48, %v257_v50 }
 0x1cf   :  { %v259_v54 = vadd.f32 %v302_v48, %v258_v52 }
 0x1d1   :  { %v263_v56 = vsel %vm262_vm14, %v302_v48, %v259_v54 }
 0x1d2   :  { %v268_v57 = vsel %vm265_vm15, %v267_v55, %v263_v56 }
 0x1d3   :  { %270 = vst.msk [vmem:[#allocation6] sm:$0x3] %vm41_vm1, %v268_v57 }
 0x1d4   :  { %281 = dma.vmem_to_hbm [thread:$0]  %s277_s3, 32, %s279_s4, [#allocation5]  }
 0x1d5   :  { %353 = dma.done.wait [#allocation5], 32  }
 0x1d6   :  { %354 = vsyncadd [#allocation5], 4294967264 }
 0x1d7   :  { %286 = vsyncpa [#allocation4], 1 }
 0x1d8   :  { %287 = vsyncpa [#allocation5], 1 }

</bundles_post_ra>
